<compile_context>
chip_gen: v7x
topology: tpu7x:2x2x1
jax: 0.10.0
libtpu: 0.0.40
codegen_flags: <defaults>
</compile_context>

<pallas_src>
import functools

import jax
import jax.numpy as jnp
from jax.experimental import pallas as pl
from jax.experimental.pallas import tpu as pltpu


def _sensory2hippo_kernel(scalars_ref, xf_ref, out_ref, *, g):
    # scalars_ref : SMEM (2,) f32  -- [global mean of xf, sigmoid(wp)]
    # xf_ref      : VMEM [tm, xf_dim]
    # out_ref     : VMEM [tm, g * xf_dim]
    mean = scalars_ref[0]
    scale = scalars_ref[1]

    # relu(xf - mean(xf))  (global mean precomputed in the wrapper)
    xr = jnp.maximum(xf_ref[...] - mean, 0.0)

    # L2 normalize along last dim:  x / max(||x||, 1e-12)
    # (clamp the sum of squares at eps^2 so rsqrt matches F.normalize exactly)
    sumsq = jnp.sum(xr * xr, axis=-1, keepdims=True)
    inv_norm = jax.lax.rsqrt(jnp.maximum(sumsq, 1e-24))

    # Fold sigmoid(wp) in before widening: tm*xf_dim mults instead of tm*p_dim.
    fn_xf = xr * (inv_norm * scale)

    # fn_xf @ kron(ones(1, g), eye(xf_dim)) == g copies of fn_xf along lanes.
    # No MXU, no W_tile; single lane-dense store of the whole output block.
    out_ref[...] = jnp.concatenate([fn_xf] * g, axis=-1)


def _pick_batch_tile(batch):
    # Biggest sublane-aligned tile that divides the batch (full array if the
    # batch is not 8-aligned -- a full-extent block is always legal).
    if batch % 8 != 0:
        return batch
    tm = min(batch, 256)
    while batch % tm != 0:
        tm -= 8
    return tm


def sensory2hippo(xf, wp, g_downsampled_dimension):
    """xf: [B, xf_dim] f32, wp: (1,) f32 -> [B, g * xf_dim] f32."""
    B, xf_dim = xf.shape
    g = int(g_downsampled_dimension)
    p_dim = g * xf_dim
    tm = _pick_batch_tile(B)

    # Scalars that are constant across the whole grid: hoist out of the kernel.
    # (The global mean spans the whole batch, so precomputing it here is what
    # makes batch tiling legal without changing semantics.)
    mean = jnp.mean(xf)
    scale = jax.nn.sigmoid(wp.reshape(()))
    scalars = jnp.stack([mean, scale]).astype(jnp.float32)

    kernel = functools.partial(_sensory2hippo_kernel, g=g)
    return pl.pallas_call(
        kernel,
        out_shape=jax.ShapeDtypeStruct((B, p_dim), jnp.float32),
        grid=(B // tm,),
        in_specs=[
            pl.BlockSpec(memory_space=pltpu.SMEM),         # [mean, sigmoid(wp)]
            pl.BlockSpec((tm, xf_dim), lambda i: (i, 0)),  # xf batch tile
        ],
        out_specs=pl.BlockSpec((tm, p_dim), lambda i: (i, 0)),
        compiler_params=pltpu.CompilerParams(
            dimension_semantics=("parallel",)),
    )(scalars, xf)


def make_w_tile(g, xf_dim):
    # Only used by the pure-JAX reference; the kernel never materializes it.
    return jnp.kron(jnp.ones((1, g), dtype=jnp.float32),
                    jnp.eye(xf_dim, dtype=jnp.float32))


def reference(xf, wp, g):
    w_tile = make_w_tile(g, xf.shape[1])
    xr = jnp.maximum(xf - jnp.mean(xf), 0.0)
    norm = jnp.sqrt(jnp.sum(xr * xr, axis=-1, keepdims=True))
    fn_xf = xr / jnp.maximum(norm, 1e-12)
    return jax.nn.sigmoid(wp[0]) * (fn_xf @ w_tile)


if __name__ == "__main__":
    batch = 8
    xf_dimension = 16
    g_downsampled_dimension = 8   # -> p_dim = 128

    key = jax.random.PRNGKey(0)
    xf = jax.random.normal(key, (batch, xf_dimension), dtype=jnp.float32)
    wp = jnp.ones((1,), dtype=jnp.float32)   # nn.Parameter(torch.ones(1))

    out = sensory2hippo(xf, wp, g_downsampled_dimension)
    out = jax.block_until_ready(out)

    ref = reference(xf, wp, g_downsampled_dimension)
    assert out.shape == (batch, g_downsampled_dimension * xf_dimension)
    assert jnp.allclose(out, ref, atol=1e-5, rtol=1e-5)

    print("KERNEL_OK")
</pallas_src>

<mosaic_0001>
module attributes {stable_mosaic.version = 11 : i64} {
  func.func @_sensory2hippo_kernel(%arg0: i32, %arg1: memref<2xf32, #tpu.memory_space<smem>>, %arg2: memref<8x16xf32, #tpu.memory_space<vmem>>, %arg3: memref<8x128xf32, #tpu.memory_space<vmem>>) attributes {dimension_semantics = [#tpu.dimension_semantics<parallel>], iteration_bounds = array<i64: 1>, scalar_prefetch = 0 : i64, scratch_operands = 0 : i64, tpu.core_type = #tpu.core_type<tc>, window_params = [{transform_indices = @transform_0, window_bounds = array<i64: 2>}, {transform_indices = @transform_1, window_bounds = array<i64: 8, 16>}, {transform_indices = @transform_2, window_bounds = array<i64: 8, 128>}]} {
    %c0 = arith.constant 0 : index
    %0 = memref.load %arg1[%c0] : memref<2xf32, #tpu.memory_space<smem>>
    %c1 = arith.constant 1 : index
    %1 = memref.load %arg1[%c1] : memref<2xf32, #tpu.memory_space<smem>>
    %c0_0 = arith.constant 0 : index
    %c0_1 = arith.constant 0 : index
    %2 = vector.load %arg2[%c0_0, %c0_1] : memref<8x16xf32, #tpu.memory_space<vmem>>, vector<8x16xf32>
    %3 = vector.broadcast %0 : f32 to vector<8x16xf32>
    %4 = arith.subf %2, %3 : vector<8x16xf32>
    %cst = arith.constant 0.000000e+00 : f32
    %5 = vector.broadcast %cst : f32 to vector<8x16xf32>
    %6 = arith.maximumf %4, %5 : vector<8x16xf32>
    %7 = arith.mulf %6, %6 : vector<8x16xf32>
    %cst_2 = arith.constant dense<0.000000e+00> : vector<8xf32>
    %8 = vector.multi_reduction <add>, %7, %cst_2 [1] : vector<8x16xf32> to vector<8xf32>
    %9 = vector.shape_cast %8 : vector<8xf32> to vector<8x1xf32>
    %cst_3 = arith.constant 1.000000e-24 : f32
    %10 = vector.broadcast %cst_3 : f32 to vector<8x1xf32>
    %11 = arith.maximumf %9, %10 : vector<8x1xf32>
    %12 = math.rsqrt %11 : vector<8x1xf32>
    %13 = vector.broadcast %1 : f32 to vector<8x1xf32>
    %14 = arith.mulf %12, %13 : vector<8x1xf32>
    %15 = vector.broadcast %14 : vector<8x1xf32> to vector<8x16xf32>
    %16 = arith.mulf %6, %15 : vector<8x16xf32>
    %17 = tpu.concatenate %16, %16, %16, %16, %16, %16, %16, %16 in 1 : vector<8x16xf32>, vector<8x16xf32>, vector<8x16xf32>, vector<8x16xf32>, vector<8x16xf32>, vector<8x16xf32>, vector<8x16xf32>, vector<8x16xf32> -> vector<8x128xf32>
    %c0_4 = arith.constant 0 : index
    %c0_5 = arith.constant 0 : index
    %18 = vector.load %arg3[%c0_4, %c0_5] : memref<8x128xf32, #tpu.memory_space<vmem>>, vector<8x128xf32>
    tpu.vector_store %arg3[%c0_4, %c0_5], %17 {strides = array<i32>} : memref<8x128xf32, #tpu.memory_space<vmem>>, vector<8x128xf32>,
    return
  }
  func.func @transform_0(%arg0: i32) -> i32 {
    %c0_i32 = arith.constant 0 : i32
    %c0_i32_0 = arith.constant 0 : i32
    return %c0_i32 : i32
  }
  func.func @transform_1(%arg0: i32) -> (i32, i32) {
    %c0_i32 = arith.constant 0 : i32
    %c0_i32_0 = arith.constant 0 : i32
    return %arg0, %c0_i32 : i32, i32
  }
  func.func @transform_2(%arg0: i32) -> (i32, i32) {
    %c0_i32 = arith.constant 0 : i32
    %c0_i32_0 = arith.constant 0 : i32
    return %arg0, %c0_i32 : i32, i32
  }
}

</mosaic_0001>

<bundles_post_ra>
// kernel: tpu_custom_call.1
= control target key start
LH: loop header
LB: loop body
LE: loop exit
PB: predicated region body
PF: predicated region fallthrough
CT: control target
= control target key end

     0   :  { %7 = vsyncpa [#allocation5], 0  ;;  %s239_s0 = inlined_call_operand.hbm [shape: f32[2], index: 0, kind: input, shape index: {}]   ;;  %s240_s1 = inlined_call_operand.hbm [shape: f32[8,16], index: 1, kind: input, shape index: {}]   ;;  %s241_s2 = inlined_call_operand.hbm [shape: f32[8,128], index: 2, kind: output, shape index: {}]  }
   0x1   :  { %8 = vsyncpa [#allocation3], 0 }
   0x2   :  { %9 = vsyncpa [#allocation4], 0  ;;  %s116_s11 = scalar_lea.hbm %s239_s0, 16 }
   0x3   :  { %p117_p0 = scmp.ne.s32.totalorder %s239_s0, %s116_s11  ;;  %p120_p1 = scmp.lt.u32.totalorder %s116_s11, %s239_s0 }
   0x5   :  { %p122_p2 = pnand %p120_p1, %p117_p0 }
   0x7   :  { %125 = shalt.err (!%p122_p2)
}
   0x8   :  { %s176_s16 = smov [#allocation2]   ;;  %s177_s19 = smov [#allocation6]  }
   0x9   :  { %17 = dma.hbm_to_smem %s239_s0, 16, %s176_s16, [#allocation5]  }
   0xa   :  { %s24_s20 = sshll.u32 %s177_s19, 4  ;;  %s126_s23 = scalar_lea.hbm %s240_s1, 128  ;;  %s25_s20 = int_to_ptr.vmem [resolvable:$true] %s24_s20 }
   0xb   :  { %p127_p3 = scmp.ne.s32.totalorder %s240_s1, %s126_s23  ;;  %p130_p4 = scmp.lt.u32.totalorder %s126_s23, %s240_s1 }
   0xd   :  { %p132_p5 = pnand %p130_p4, %p127_p3 }
   0xf   :  { %135 = shalt.err (!%p132_p5)
}
  0x10   :  { %s136_s28 = scalar_lea.vmem %s25_s20, 128  ;;  %p141_p7 = scmp.lt.s32.totalorder %s25_s20, %s25_s20 }
  0x11   :  { %p137_p6 = scmp.ne.s32.totalorder %s25_s20, %s136_s28  ;;  %p142_p8 = scmp.lt.s32.totalorder %s136_s28, %s136_s28 }
  0x13   :  { %p143_p9 = por %p142_p8, %p141_p7 }
  0x15   :  { %p144_p10 = pnand %p143_p9, %p137_p6 }
  0x17   :  { %147 = shalt.err (!%p144_p10)
}
  0x18   :  { %27 = dma.hbm_to_vmem [thread:$0]  %s240_s1, 128, %s25_s20, [#allocation3]  }
  0x19   :  { %170 = dma.done.wait [#allocation5], 16  }
  0x1a   :  { %171 = vsyncadd [#allocation5], 4294967280 }
  0x1b   :  { %172 = dma.done.wait [#allocation3], 128  }
  0x1c   :  { %173 = vsyncadd [#allocation3], 4294967168 }
  0x1d   :  { %34 = sfence }
  0x1e   :  { %s35_s30 = sld [smem:[#allocation2]]  ;;  %v37_v0 = vld [vmem:[#allocation6] sm:$0xff]  ;;  %vm42_vm0 = vcmask 130048   ;;  %s103_s3 = sld [smem:[#allocation2 + $0x1]]  ;;  %vm74_vm1 = vcmask 261120   ;;  %vm76_vm2 = vcmask 392192  }
  0x1f   :  { %s178_s1 = smov 32   ;;  %s179_s4 = smov 16   ;;  %vm78_vm3 = vcmask 523264   ;;  %vm80_vm4 = vcmask 654336   ;;  %vm82_vm5 = vcmask 785408   ;;  %vm84_vm6 = vcmask 916480  }
  0x20   :  { %s180_s5 = smov 48   ;;  %s181_s6 = smov 64  }
  0x21   :  { %s182_s7 = smov 80   ;;  %s183_s8 = smov 96  }
  0x22   :  { %s184_s9 = smov 112   ;;  %s185_s10 = smov [#allocation7]  }
  0x23   :  { %s93_s11 = sshll.u32 %s185_s10, 4  ;;  %s94_s11 = int_to_ptr.vmem [resolvable:$true] %s93_s11 }
  0x24   :  { %v38_v1 = vstv %s35_s30  ;;  %v48_v8 = vstv %s103_s3  ;;  %s148_s12 = scalar_lea.vmem %s94_s11, 128  ;;  %p153_p12 = scmp.lt.s32.totalorder %s94_s11, %s94_s11 }
  0x25   :  { %v39_v2 = vsub.f32 %v37_v0, %v38_v1  ;;  %p149_p11 = scmp.ne.s32.totalorder %s94_s11, %s148_s12  ;;  %p154_p13 = scmp.lt.s32.totalorder %s148_s12, %s148_s12 }
  0x27   :  { %v40_v3 = vmax.f32 %v39_v2, 0.0  ;;  %p155_p0 = por %p154_p13, %p153_p12 }
  0x29   :  { %v41_v4 = vmul.f32 %v40_v3, %v40_v3  ;;  %p156_p1 = pnand %p155_p0, %p149_p11 }
  0x2b   :  { %v43_v5 = vsel %vm42_vm0, %v41_v4, 0.0 }
  0x2c   :  { %44 = vadd.xlane.f32.xlu0 %v43_v5 }
  0xb9   :  { %v45_v6 = vpop.xlane.xlu0 %44 }
  0xba   :  { %v46_v7 = vmax.f32 %v45_v6, 1e-24 }
  0xbc   :  { %114 = vrsqrt.f32 %v46_v7 }
  0xc6   :  { %v115_v9 = vpop.eup %114 }
  0xc7   :  { %v49_v10 = vmul.f32 %v115_v9, %v48_v8 }
  0xc9   :  { %v50_v11 = vmul.f32 %v49_v10, %v40_v3 }
  0xcb   :  { %55 = vrot.lane.b32.xlu1 %v50_v11, %s178_s1  ;;  %52 = vrot.lane.b32.xlu0 %v50_v11, %s179_s4 }
  0xcf   :  { %58 = vrot.lane.b32.xlu1 %v50_v11, %s180_s5 }
  0xd3   :  { %61 = vrot.lane.b32.xlu1 %v50_v11, %s181_s6 }
  0xd7   :  { %64 = vrot.lane.b32.xlu1 %v50_v11, %s182_s7 }
  0xdb   :  { %67 = vrot.lane.b32.xlu1 %v50_v11, %s183_s8 }
  0xdf   :  { %70 = vrot.lane.b32.xlu1 %v50_v11, %s184_s9 }
 0x13d   :  { %v56_v12 = vpop.permute.xlu1 %55  ;;  %v53_v15 = vpop.permute.xlu0 %52 }
 0x13e   :  { %v73_v17 = vsel %vm42_vm0, %v50_v11, %v53_v15 }
 0x13f   :  { %v75_v18 = vsel %vm74_vm1, %v73_v17, %v56_v12 }
 0x141   :  { %v59_v13 = vpop.permute.xlu1 %58 }
 0x142   :  { %v77_v20 = vsel %vm76_vm2, %v75_v18, %v59_v13 }
 0x145   :  { %v62_v14 = vpop.permute.xlu1 %61 }
 0x146   :  { %v79_v21 = vsel %vm78_vm3, %v77_v20, %v62_v14 }
 0x149   :  { %v65_v16 = vpop.permute.xlu1 %64 }
 0x14a   :  { %v81_v22 = vsel %vm80_vm4, %v79_v21, %v65_v16 }
 0x14d   :  { %v68_v19 = vpop.permute.xlu1 %67 }
 0x14e   :  { %v83_v23 = vsel %vm82_vm5, %v81_v22, %v68_v19 }
 0x151   :  { %v71_v24 = vpop.permute.xlu1 %70 }
 0x152   :  { %v85_v25 = vsel %vm84_vm6, %v83_v23, %v71_v24 }
 0x153   :  { %86 = vst [vmem:[#allocation7] sm:$0xff] %v85_v25 }
 0x154   :  { %159 = shalt.err (!%p156_p1)
}
 0x155   :  { %s160_s15 = scalar_lea.hbm %s241_s2, 128 }
 0x156   :  { %p161_p2 = scmp.ne.s32.totalorder %s241_s2, %s160_s15  ;;  %p164_p3 = scmp.lt.u32.totalorder %s160_s15, %s241_s2 }
 0x158   :  { %p166_p4 = pnand %p164_p3, %p161_p2 }
 0x15a   :  { %169 = shalt.err (!%p166_p4)
}
 0x15b   :  { %96 = dma.vmem_to_hbm [thread:$0]  %s94_s11, 128, %s241_s2, [#allocation4]  }
 0x15c   :  { %174 = dma.done.wait [#allocation4], 128  }
 0x15d   :  { %175 = vsyncadd [#allocation4], 4294967168 }
 0x15e   :  { %100 = vsyncpa [#allocation3], 1 }
 0x15f   :  { %101 = vsyncpa [#allocation4], 1 }
 0x160   :  { %102 = vsyncpa [#allocation5], 1 }

</bundles_post_ra>
